<compile_context>
chip_gen: v5e
topology: v5e:2x2
jax: 0.10.0
libtpu: 0.0.40
codegen_flags: <defaults>
</compile_context>

<pallas_src>
import functools

import jax
import jax.numpy as jnp
from jax.experimental import pallas as pl
from jax.experimental.pallas import tpu as pltpu


# --------------------------------------------------------------------------
# Kernel: one tile of TB batch elements per grid step.
# --------------------------------------------------------------------------
def _pdg_attn_kernel(x_ref, de_ref, wqkv_ref, bqkv_ref, out_ref,
                     *, tb, n, d, mm_dtype, apply_nan_to_num):
    # Fused QKV projection: one (TB*N, D) @ (D, 3D) MXU matmul, f32 accumulate.
    # (The reshape merges leading dims only; layout-preserving when N % 8 == 0.)
    x2d = x_ref[...].reshape(tb * n, d)
    qkv = jnp.dot(x2d, wqkv_ref[...],
                  preferred_element_type=jnp.float32) + bqkv_ref[...]

    # sqrt(D) scaling was folded into the Q weights/bias in the wrapper.
    q = qkv[:, :d].reshape(tb, n, d)
    k = qkv[:, d:2 * d].reshape(tb, n, d)
    v = qkv[:, 2 * d:].reshape(tb, n, d)

    # Batched QK^T plus the precomputed dist-embedding mean term.
    attn = jnp.einsum('bqd,bkd->bqk',
                      q.astype(mm_dtype), k.astype(mm_dtype),
                      preferred_element_type=jnp.float32)
    attn = attn + de_ref[...].astype(jnp.float32)

    if apply_nan_to_num:
        # torch.nan_to_num(attn, nan=0.0, posinf=1.0, neginf=-1.0)
        attn = jnp.where(jnp.isnan(attn), jnp.float32(0.0), attn)
        attn = jnp.where(attn == jnp.inf, jnp.float32(1.0), attn)
        attn = jnp.where(attn == -jnp.inf, jnp.float32(-1.0), attn)

    # Numerically-stable softmax over the last dim.  Exact reciprocal: the
    # divide runs on the tiny (TB, N, 1) row-sum tensor only.
    attn = attn - jnp.max(attn, axis=-1, keepdims=True)
    e = jnp.exp(attn)
    inv = jnp.float32(1.0) / jnp.sum(e, axis=-1, keepdims=True)
    p = e * inv

    out = jnp.einsum('bqk,bkd->bqd',
                     p.astype(mm_dtype), v.astype(mm_dtype),
                     preferred_element_type=jnp.float32)
    out_ref[...] = out.astype(out_ref.dtype)


# --------------------------------------------------------------------------
# One-time parameter fusion (hoist out of the per-call hot path)
# --------------------------------------------------------------------------
def fuse_pdg_params(params, matmul_dtype=jnp.bfloat16):
    """Fuse W_q/W_k/W_v into one (D, 3D) weight, fold the sqrt(D) logit scale
    into the Q third, and reduce the dist-embedding to its per-channel mean."""
    wq, wk, wv = (params[k]["weight"] for k in ("w_q", "w_k", "w_v"))
    bq, bk, bv = (params[k]["bias"] for k in ("w_q", "w_k", "w_v"))
    D = wq.shape[0]
    # Module computes attn = QK^T / D**-0.5, i.e. multiplies by sqrt(D).
    inv_scale = jnp.float32(float(D) ** 0.5)
    # PyTorch Linear stores weight as (out, in) -> transpose for x @ W.
    wqkv = jnp.concatenate([wq.T * inv_scale, wk.T, wv.T], axis=1)   # (D, 3D)
    bqkv = jnp.concatenate([bq * inv_scale, bk, bv]).reshape(1, 3 * D)

    wd = params["dist_embedding"]["weight"]       # (D, 2) torch layout
    bd = params["dist_embedding"]["bias"]         # (D,)
    # mean_d(dist @ Wd^T + bd) == dist0*mean(Wd[:,0]) + dist1*mean(Wd[:,1]) + mean(bd)
    wd_mean = jnp.mean(wd, axis=0).astype(jnp.float32)   # (2,)
    bd_mean = jnp.mean(bd).astype(jnp.float32)           # scalar

    return (wqkv.astype(matmul_dtype), bqkv.astype(jnp.float32),
            wd_mean, bd_mean)


# --------------------------------------------------------------------------
# Wrapper
# --------------------------------------------------------------------------
def pdg_self_attention(x, dist_matrix, params=None, num_heads=4, *,
                       fused=None, batch_tile=None,
                       matmul_dtype=jnp.bfloat16, assume_finite=False):
    """Pallas TPU implementation of PDGSelfAttention.forward.

    num_heads is accepted (and unused) to match the PyTorch module.
    matmul_dtype=jnp.bfloat16 (default) keeps f32 accumulation / f32 softmax;
    pass jnp.float32 for bit-tight validation.  Pass `fused=fuse_pdg_params(
    params, matmul_dtype)` to precompute weights once per parameter set.
    """
    B, N, D = x.shape
    out_dtype = x.dtype
    mm_np = jnp.dtype(matmul_dtype)

    if fused is None:
        assert params is not None, "pass either params or fused weights"
        fused = fuse_pdg_params(params, matmul_dtype)
    wqkv, bqkv, wd_mean, bd_mean = fused

    # Dist-embedding mean term, (B, N, N), lane-dense.  Stream it as bf16 on
    # the bf16 path to halve the dominant HBM read at large N.
    de_dtype = jnp.float32 if mm_np == jnp.dtype(jnp.float32) else jnp.bfloat16
    de_mean = (dist_matrix[..., 0] * wd_mean[0]
               + dist_matrix[..., 1] * wd_mean[1]
               + bd_mean).astype(de_dtype)

    x_in = x.astype(matmul_dtype)

    # ---- generation-aware VMEM budgeting / batch-tile pick ----------------
    try:
        info = pltpu.get_tpu_info()
        vmem_cap = int(getattr(info, "vmem_capacity_bytes", 128 << 20))
    except Exception:                      # interpret mode / no TPU visible
        vmem_cap = 128 << 20
    # ~2 MiB score budget on 64-MiB-VMEM parts (v7x-class), ~4 MiB otherwise.
    score_budget = (2 << 20) if vmem_cap <= (64 << 20) else (4 << 20)

    if batch_tile is None:
        batch_tile = 1
        # Cap at B//2: keep >= 2 grid steps so the "parallel" batch axis can
        # shard across both v7x TensorCores (harmless on 1-TC chips).
        max_tb = max(1, B // 2)
        for cand in range(1, max_tb + 1):
            if (B % cand == 0 and cand * N * N * 4 <= score_budget
                    and cand * N <= 2048):
                batch_tile = cand
    assert B % batch_tile == 0
    tb = batch_tile

    # Per-step VMEM footprint (double-buffered streams, single-buffered
    # weights, f32 in-kernel intermediates) -> explicit scoped-VMEM limit.
    x_tile = tb * N * D * mm_np.itemsize
    de_tile = tb * N * N * jnp.dtype(de_dtype).itemsize
    out_tile = tb * N * D * jnp.dtype(out_dtype).itemsize
    w_bytes = D * 3 * D * mm_np.itemsize + 3 * D * 4
    score_f32 = tb * N * N * 4
    qkv_f32 = tb * N * 3 * D * 4
    footprint = (2 * x_tile + 2 * de_tile + 2 * out_tile + w_bytes
                 + 4 * score_f32 + qkv_f32 + 3 * tb * N * D * 4)
    vmem_limit = min(max(int(footprint * 1.5) + (4 << 20), 32 << 20),
                     (vmem_cap * 3) // 4)

    # Advisory cost estimate for the XLA scheduler around the custom call.
    flops = 2 * B * N * D * (3 * D) + 4 * B * N * N * D
    transcendentals = B * N * N
    bytes_accessed = (B * N * D * mm_np.itemsize
                      + B * N * N * jnp.dtype(de_dtype).itemsize
                      + w_bytes
                      + B * N * D * jnp.dtype(out_dtype).itemsize)

    kernel = functools.partial(_pdg_attn_kernel, tb=tb, n=N, d=D,
                               mm_dtype=matmul_dtype,
                               apply_nan_to_num=not assume_finite)

    return pl.pallas_call(
        kernel,
        out_shape=jax.ShapeDtypeStruct((B, N, D), out_dtype),
        grid=(B // tb,),
        in_specs=[
            pl.BlockSpec((tb, N, D), lambda b: (b, 0, 0)),       # x tile
            pl.BlockSpec((tb, N, N), lambda b: (b, 0, 0)),       # de_mean tile
            pl.BlockSpec((D, 3 * D), lambda b: (0, 0),           # fused W_qkv
                         pipeline_mode=pl.Buffered(buffer_count=1)),
            pl.BlockSpec((1, 3 * D), lambda b: (0, 0),           # fused b_qkv
                         pipeline_mode=pl.Buffered(buffer_count=1)),
        ],
        out_specs=pl.BlockSpec((tb, N, D), lambda b: (b, 0, 0)),
        compiler_params=pltpu.CompilerParams(
            dimension_semantics=("parallel",),
            vmem_limit_bytes=vmem_limit),
        cost_estimate=pl.CostEstimate(flops=flops,
                                      transcendentals=transcendentals,
                                      bytes_accessed=bytes_accessed),
    )(x_in, de_mean, wqkv, bqkv)


# --------------------------------------------------------------------------
# Deterministic parameter init (mimics nn.Linear default uniform init)
# --------------------------------------------------------------------------
def _init_linear(key, in_dim, out_dim):
    kw, kb = jax.random.split(key)
    bound = 1.0 / (in_dim ** 0.5)
    return {
        "weight": jax.random.uniform(kw, (out_dim, in_dim), jnp.float32,
                                     -bound, bound),
        "bias": jax.random.uniform(kb, (out_dim,), jnp.float32, -bound, bound),
    }


def init_params(key, embed_dim):
    k1, k2, k3, k4 = jax.random.split(key, 4)
    return {
        "w_q": _init_linear(k1, embed_dim, embed_dim),
        "w_k": _init_linear(k2, embed_dim, embed_dim),
        "w_v": _init_linear(k3, embed_dim, embed_dim),
        "dist_embedding": _init_linear(k4, 2, embed_dim),
    }


# --------------------------------------------------------------------------
# Pure-JAX reference (mirrors the PyTorch forward) for validation
# --------------------------------------------------------------------------
def reference_forward(x, dist_matrix, params):
    def lin(p, inp):
        return inp @ p["weight"].T + p["bias"]

    B, N, D = x.shape
    Q = lin(params["w_q"], x)
    K = lin(params["w_k"], x)
    V = lin(params["w_v"], x)
    dist_embed = lin(params["dist_embedding"], dist_matrix)     # (B, N, N, D)
    scale = D ** (-0.5)
    attn = jnp.matmul(Q, jnp.swapaxes(K, -2, -1)) / scale + dist_embed.mean(-1)
    attn = jnp.nan_to_num(attn, nan=0.0, posinf=1.0, neginf=-1.0)
    attn = jax.nn.softmax(attn, axis=-1)
    return jnp.matmul(attn, V)


if __name__ == "__main__":
    B, N, D = 2, 8, 32
    num_heads = 4  # unused in forward, matches the PyTorch module

    key = jax.random.PRNGKey(0)
    kx, kd, kp = jax.random.split(key, 3)

    x = jax.random.normal(kx, (B, N, D), jnp.float32)
    dist_matrix = jax.random.normal(kd, (B, N, N, 2), jnp.float32)
    params = init_params(kp, D)

    ref = reference_forward(x, dist_matrix, params)

    # --- f32 path: tight numerical validation ------------------------------
    out_f32 = jax.block_until_ready(
        pdg_self_attention(x, dist_matrix, params, num_heads,
                           matmul_dtype=jnp.float32))
    assert out_f32.shape == (B, N, D)
    err = float(jnp.max(jnp.abs(out_f32 - ref)))
    assert err < 1e-4, f"f32 max abs err {err}"

    # --- default bf16 path: sanity check at bf16 MXU operand precision -----
    out_bf16 = jax.block_until_ready(
        pdg_self_attention(x, dist_matrix, params, num_heads))
    assert out_bf16.shape == (B, N, D)
    assert bool(jnp.all(jnp.isfinite(out_bf16)))
    rel = float(jnp.linalg.norm(out_bf16.astype(jnp.float32) - ref)
                / jnp.linalg.norm(ref))
    assert rel < 0.15, f"bf16 relative error {rel}"

    print("KERNEL_OK")
</pallas_src>

<mosaic_0001>
module attributes {stable_mosaic.version = 11 : i64} {
  func.func @_pdg_attn_kernel(%arg0: i32, %arg1: memref<1x8x32xf32, #tpu.memory_space<vmem>>, %arg2: memref<1x8x8xf32, #tpu.memory_space<vmem>>, %arg3: memref<32x96xf32, #tpu.memory_space<vmem>>, %arg4: memref<1x96xf32, #tpu.memory_space<vmem>>, %arg5: memref<1x8x32xf32, #tpu.memory_space<vmem>>) attributes {dimension_semantics = [#tpu.dimension_semantics<parallel>], iteration_bounds = array<i64: 2>, scalar_prefetch = 0 : i64, scratch_operands = 0 : i64, tpu.core_type = #tpu.core_type<tc>, window_params = [{transform_indices = @transform_0, window_bounds = array<i64: 1, 8, 32>}, {transform_indices = @transform_1, window_bounds = array<i64: 1, 8, 8>}, {pipeline_mode = #tpu.pipeline_mode<synchronous>, transform_indices = @transform_2, window_bounds = array<i64: 32, 96>}, {pipeline_mode = #tpu.pipeline_mode<synchronous>, transform_indices = @transform_3, window_bounds = array<i64: 1, 96>}, {transform_indices = @transform_4, window_bounds = array<i64: 1, 8, 32>}]} {
    %c0 = arith.constant 0 : index
    %c0_0 = arith.constant 0 : index
    %c0_1 = arith.constant 0 : index
    %0 = vector.load %arg1[%c0, %c0_0, %c0_1] : memref<1x8x32xf32, #tpu.memory_space<vmem>>, vector<1x8x32xf32>
    %1 = vector.shape_cast %0 : vector<1x8x32xf32> to vector<8x32xf32>
    %c0_2 = arith.constant 0 : index
    %c0_3 = arith.constant 0 : index
    %2 = vector.load %arg3[%c0_2, %c0_3] : memref<32x96xf32, #tpu.memory_space<vmem>>, vector<32x96xf32>
    %cst = arith.constant dense<0.000000e+00> : vector<8x96xf32>
    %3 = tpu.matmul %1, %2, %cst {dimension_numbers = #tpu.dot_dimension_numbers<[1], [0], [0], [1], [0, 0, 1, 1], [], []>} : vector<8x32xf32>, vector<32x96xf32>, vector<8x96xf32> -> vector<8x96xf32>
    %c0_4 = arith.constant 0 : index
    %c0_5 = arith.constant 0 : index
    %4 = vector.load %arg4[%c0_4, %c0_5] : memref<1x96xf32, #tpu.memory_space<vmem>>, vector<1x96xf32>
    %5 = vector.broadcast %4 : vector<1x96xf32> to vector<8x96xf32>
    %6 = arith.addf %3, %5 : vector<8x96xf32>
    %7 = vector.extract_strided_slice %6 {offsets = [0, 0], sizes = [8, 32], strides = [1, 1]} : vector<8x96xf32> to vector<8x32xf32>
    %8 = vector.shape_cast %7 : vector<8x32xf32> to vector<1x8x32xf32>
    %9 = vector.extract_strided_slice %6 {offsets = [0, 32], sizes = [8, 32], strides = [1, 1]} : vector<8x96xf32> to vector<8x32xf32>
    %10 = vector.shape_cast %9 : vector<8x32xf32> to vector<1x8x32xf32>
    %11 = vector.extract_strided_slice %6 {offsets = [0, 64], sizes = [8, 32], strides = [1, 1]} : vector<8x96xf32> to vector<8x32xf32>
    %12 = vector.shape_cast %11 : vector<8x32xf32> to vector<1x8x32xf32>
    "tpu.trace_start"() <{level = 10 : i32, message = "bqd,bkd->bqk"}> : () -> ()
    %cst_6 = arith.constant dense<0.000000e+00> : vector<1x8x8xf32>
    %13 = tpu.matmul %8, %10, %cst_6 {dimension_numbers = #tpu.dot_dimension_numbers<[2], [2], [1], [1], [0, 0, 0, 1, 1, 1], [0], [0]>} : vector<1x8x32xf32>, vector<1x8x32xf32>, vector<1x8x8xf32> -> vector<1x8x8xf32>
    "tpu.trace_stop"() : () -> ()
    %c0_7 = arith.constant 0 : index
    %c0_8 = arith.constant 0 : index
    %c0_9 = arith.constant 0 : index
    %14 = vector.load %arg2[%c0_7, %c0_8, %c0_9] : memref<1x8x8xf32, #tpu.memory_space<vmem>>, vector<1x8x8xf32>
    %15 = arith.addf %13, %14 : vector<1x8x8xf32>
    %16 = arith.cmpf one, %15, %15 : vector<1x8x8xf32>
    %cst_10 = arith.constant 0.000000e+00 : f32
    %17 = vector.broadcast %cst_10 : f32 to vector<1x8x8xf32>
    %18 = arith.select %16, %17, %15 : vector<1x8x8xi1>, vector<1x8x8xf32>
    %cst_11 = arith.constant 0x7F800000 : f32
    %19 = vector.broadcast %cst_11 : f32 to vector<1x8x8xf32>
    %20 = arith.cmpf oeq, %18, %19 : vector<1x8x8xf32>
    %cst_12 = arith.constant 1.000000e+00 : f32
    %21 = vector.broadcast %cst_12 : f32 to vector<1x8x8xf32>
    %22 = arith.select %20, %21, %18 : vector<1x8x8xi1>, vector<1x8x8xf32>
    %cst_13 = arith.constant 0xFF800000 : f32
    %23 = vector.broadcast %cst_13 : f32 to vector<1x8x8xf32>
    %24 = arith.cmpf oeq, %22, %23 : vector<1x8x8xf32>
    %cst_14 = arith.constant -1.000000e+00 : f32
    %25 = vector.broadcast %cst_14 : f32 to vector<1x8x8xf32>
    %26 = arith.select %24, %25, %22 : vector<1x8x8xi1>, vector<1x8x8xf32>
    %cst_15 = arith.constant dense<0xFF800000> : vector<1x8xf32>
    %27 = vector.multi_reduction <maximumf>, %26, %cst_15 [2] : vector<1x8x8xf32> to vector<1x8xf32>
    %28 = vector.shape_cast %27 : vector<1x8xf32> to vector<1x8x1xf32>
    %29 = vector.broadcast %28 : vector<1x8x1xf32> to vector<1x8x8xf32>
    %30 = arith.subf %26, %29 : vector<1x8x8xf32>
    %31 = math.exp %30 : vector<1x8x8xf32>
    %cst_16 = arith.constant dense<0.000000e+00> : vector<1x8xf32>
    %32 = vector.multi_reduction <add>, %31, %cst_16 [2] : vector<1x8x8xf32> to vector<1x8xf32>
    %33 = vector.shape_cast %32 : vector<1x8xf32> to vector<1x8x1xf32>
    %cst_17 = arith.constant 1.000000e+00 : f32
    %34 = vector.broadcast %cst_17 : f32 to vector<1x8x1xf32>
    %35 = arith.divf %34, %33 : vector<1x8x1xf32>
    %36 = vector.broadcast %35 : vector<1x8x1xf32> to vector<1x8x8xf32>
    %37 = arith.mulf %31, %36 : vector<1x8x8xf32>
    "tpu.trace_start"() <{level = 10 : i32, message = "bqk,bkd->bqd"}> : () -> ()
    %cst_18 = arith.constant dense<0.000000e+00> : vector<1x8x32xf32>
    %38 = tpu.matmul %37, %12, %cst_18 {dimension_numbers = #tpu.dot_dimension_numbers<[2], [1], [1], [2], [0, 0, 0, 1, 1, 2], [0], [0]>} : vector<1x8x8xf32>, vector<1x8x32xf32>, vector<1x8x32xf32> -> vector<1x8x32xf32>
    "tpu.trace_stop"() : () -> ()
    %c0_19 = arith.constant 0 : index
    %c0_20 = arith.constant 0 : index
    %c0_21 = arith.constant 0 : index
    %39 = vector.load %arg5[%c0_19, %c0_20, %c0_21] : memref<1x8x32xf32, #tpu.memory_space<vmem>>, vector<1x8x32xf32>
    tpu.vector_store %arg5[%c0_19, %c0_20, %c0_21], %38 {strides = array<i32>} : memref<1x8x32xf32, #tpu.memory_space<vmem>>, vector<1x8x32xf32>,
    return
  }
  func.func @transform_0(%arg0: i32) -> (i32, i32, i32) {
    %c0_i32 = arith.constant 0 : i32
    %c0_i32_0 = arith.constant 0 : i32
    %c0_i32_1 = arith.constant 0 : i32
    return %arg0, %c0_i32, %c0_i32_0 : i32, i32, i32
  }
  func.func @transform_1(%arg0: i32) -> (i32, i32, i32) {
    %c0_i32 = arith.constant 0 : i32
    %c0_i32_0 = arith.constant 0 : i32
    %c0_i32_1 = arith.constant 0 : i32
    return %arg0, %c0_i32, %c0_i32_0 : i32, i32, i32
  }
  func.func @transform_2(%arg0: i32) -> (i32, i32) {
    %c0_i32 = arith.constant 0 : i32
    %c0_i32_0 = arith.constant 0 : i32
    %c0_i32_1 = arith.constant 0 : i32
    return %c0_i32, %c0_i32_0 : i32, i32
  }
  func.func @transform_3(%arg0: i32) -> (i32, i32) {
    %c0_i32 = arith.constant 0 : i32
    %c0_i32_0 = arith.constant 0 : i32
    %c0_i32_1 = arith.constant 0 : i32
    return %c0_i32, %c0_i32_0 : i32, i32
  }
  func.func @transform_4(%arg0: i32) -> (i32, i32, i32) {
    %c0_i32 = arith.constant 0 : i32
    %c0_i32_0 = arith.constant 0 : i32
    %c0_i32_1 = arith.constant 0 : i32
    return %arg0, %c0_i32, %c0_i32_0 : i32, i32, i32
  }
}

</mosaic_0001>

<bundles_post_ra>
// kernel: tpu_custom_call.1
= control target key start
LH: loop header
LB: loop body
LE: loop exit
PB: predicated region body
PF: predicated region fallthrough
CT: control target
= control target key end

     0   :  { %s976_s0 = inlined_call_operand.hbm [shape: f32[2,8,32], index: 0, kind: input, shape index: {}]   ;;  %s977_s1 = inlined_call_operand.hbm [shape: f32[2,8,8], index: 1, kind: input, shape index: {}]   ;;  %s978_s2 = inlined_call_operand.hbm [shape: f32[32,96], index: 2, kind: input, shape index: {}]   ;;  %s979_s3 = inlined_call_operand.vmem [shape: f32[1,96], index: 3, kind: input, shape index: {}]   ;;  %s980_s4 = inlined_call_operand.hbm [shape: f32[2,8,32], index: 4, kind: output, shape index: {}]  }
   0x1   :  { %982 = sst [smem:[#allocation15_spill]] %s978_s2 }
   0x2   :  { %9 = vsyncpa [#allocation3], 0 }
   0x3   :  { %11 = vsyncpa [#allocation3 + $0x1], 0 }
   0x4   :  { %12 = vsyncpa [#allocation6], 0 }
   0x5   :  { %14 = vsyncpa [#allocation6 + $0x1], 0 }
   0x6   :  { %15 = vsyncpa [#allocation4], 0 }
   0x7   :  { %17 = vsyncpa [#allocation4 + $0x1], 0  ;;  %s796_s15 = smov 0   ;;  %s798_s16 = smov 0  }
   0x8   :  { %s800_s17 = smov 0   ;;  %s802_s18 = smov 0  }
   0x9 LB: > { %983 = sst [smem:[#allocation13_spill]] %s760_s17  ;;  %s820_s22 = sadd.s32 4294967295, %s764_s18   ;;  %s764_s18 = sphi %s802_s18, %s997_s18   ;;  %s760_s17 = sphi %s800_s17, %s994_s17   ;;  %s756_s16 = sphi %s798_s16, %s996_s16   ;;  %s752_s15 = sphi %s796_s15, %s995_s15  }
   0xa   : > { %s984_s2 = sld [smem:[#allocation15_spill]]  ;;  %p509_p0 = scmp.ge.s32.totalorder %s764_s18, 1 }
   0xb   : > { %p44_p1 = scmp.eq.s32.totalorder %s820_s22, 0  ;;  %p148_p2 = scmp.lt.s32.totalorder %s764_s18, 3 }
   0xc   : > { %s766_s24 = smov [#allocation7]   ;;  %s767_s26 = smov 128  }
   0xd   : > { %p825_p3 = pnand %p509_p0, %p148_p2  ;;  %s161_s25 = sshll.u32 %s766_s24, 4  ;;  %s162_s25 = int_to_ptr.vmem [resolvable:$true] %s161_s25 }
   0xe   : > { %s768_s27 = smov 8   ;;  %s508_s28 = sadd.s32 4294967294, %s764_s18  }
   0xf   : > { %p539_p4 = pneg %p825_p3  ;;  %s836_s29 = sadd.s32 1, %s764_s18  }
  0x10   : > { %s159_s21 = sshll.u32 %s984_s2, 4  ;;  %s30_s30 = sadd.s32 1, %s760_s17  ;;  %s160_s21 = int_to_ptr.hbm [resolvable:$true] %s159_s21 }
  0x11   : > { %p540_p6 = pnand %p539_p4, %p44_p1  ;;  %s27_s5 = ssub.s32 %s764_s18, %s836_s29 }
  0x12   : > { %p37_p7 = scmp.ne.s32.totalorder %s760_s17, %s756_s16  ;;  %p28_p8 = scmp.eq.s32.totalorder %s27_s5, 0 }
  0x13   : > { %542 = dma.hbm_to_vmem [thread:$0]  (!%p540_p6), %s160_s21, 512, %s162_s25, [#allocation6], %s767_s26, %s767_s26, %s768_s27  }
  0x14   : > { %p38_p9 = scmp.eq.s32.totalorder %s764_s18, 0  ;;  %p43_p10 = scmp.ne.s32.totalorder %s756_s16, %s752_s15 }
  0x15   : > { %p135_p11 = scmp.eq.s32.totalorder %s820_s22, 1  ;;  %p141_p2 = scmp.eq.s32.totalorder %s508_s28, 1 }
  0x16   : > { %s848_s6 = scalar_select %p28_p8, %s760_s17, %s30_s30  }
  0x17   : > { %p850_p12 = por %p38_p9, %p37_p7  ;;  %p856_p13 = por %p44_p1, %p43_p10 }
  0x18   : > { %986 = sst [smem:[#allocation14_spill]] %s848_s6  ;;  %p860_p0 = por %p135_p11, %p37_p7 }
  0x19   : > { %p555_p4 = scmp.lt.s32.totalorder %s764_s18, 2  ;;  %s178_s10 = sand.u32 1, %s760_s17  }
  0x1a   : > { %p866_p6 = por %p141_p2, %p43_p10  ;;  %s512_s12 = sshll.u32 %s178_s10, 3 }
  0x1b   : > { %s513_s13 = sshll.u32 %s764_s18, 3  ;;  %s182_s24 = scalar_lea.vmem [#allocation2], %s512_s12 }
  0x1c   : > { %s186_s20 = scalar_lea.hbm %s976_s0, %s513_s13  ;;  %s190_s25 = sshll.u32 %s182_s24, 4  ;;  %s191_s25 = int_to_ptr.vmem [resolvable:$true] %s190_s25 }
  0x1d   : > { %s188_s21 = sshll.u32 %s186_s20, 4  ;;  %p876_p7 = pnand %p555_p4, %p850_p12  ;;  %s189_s21 = int_to_ptr.hbm [resolvable:$true] %s188_s21 }
  0x1e   : > { %s205_s30 = scalar_lea.hbm %s977_s1, %s513_s13  ;;  %s197_s5 = sand.u32 1, %s764_s18  }
  0x1f   : > { %s179_s2 = scalar_lea.sflag [#allocation3], %s178_s10  ;;  %s630_s14 = sshra.s32 %s189_s21, 4  ;;  %s631_s14 = int_to_ptr.hbm [resolvable:$true] %s630_s14 }
  0x20   : > { %s632_s19 = scalar_lea.hbm %s631_s14, 8  ;;  %p634_p9 = pneg %p876_p7 }
  0x21   : > { %p633_p8 = scmp.ne.s32.totalorder %s631_s14, %s632_s19  ;;  %s637_s24 = scalar_lea.hbm %s976_s0, 16 }
  0x22   : > { %p638_p12 = scmp.lt.s32.totalorder %s631_s14, %s976_s0  ;;  %p639_p2 = scmp.lt.s32.totalorder %s637_s24, %s632_s19 }
  0x23   : > { %p635_p10 = pnand %p634_p9, %p633_p8 }
  0x24   : > { %p640_p4 = por %p639_p2, %p638_p12 }
  0x25   : > { %p636_p11 = pneg %p635_p10 }
  0x27   : > { %p641_p5 = pnand %p640_p4, %p636_p11 }
  0x29   : > { %644 = shalt.err (!%p641_p5)
}
  0x2a   : > { %546 = dma.hbm_to_vmem [thread:$0]  (!%p876_p7), %s189_s21, 128, %s191_s25, %s179_s2  }
  0x2b   : > { %s207_s10 = sshll.u32 %s205_s30, 4  ;;  %s201_s13 = scalar_lea.vmem [#allocation5], %s512_s12  ;;  %s208_s10 = int_to_ptr.hbm [resolvable:$true] %s207_s10 }
  0x2c   : > { %s209_s6 = sshll.u32 %s201_s13, 4  ;;  %s198_s17 = scalar_lea.sflag [#allocation6], %s197_s5  ;;  %s210_s6 = int_to_ptr.vmem [resolvable:$true] %s209_s6 }
  0x2d   : > { %s660_s7 = sshra.s32 %s208_s10, 4  ;;  %s667_s24 = scalar_lea.hbm %s977_s1, 16  ;;  %s661_s7 = int_to_ptr.hbm [resolvable:$true] %s660_s7 }
  0x2e   : > { %s662_s20 = scalar_lea.hbm %s661_s7, 8  ;;  %p668_p5 = scmp.lt.s32.totalorder %s661_s7, %s977_s1 }
  0x2f   : > { %p663_p8 = scmp.ne.s32.totalorder %s661_s7, %s662_s20  ;;  %p669_p11 = scmp.lt.s32.totalorder %s667_s24, %s662_s20 }
  0x31   : > { %p665_p10 = pnand %p663_p8, %p634_p9  ;;  %p670_p2 = por %p669_p11, %p668_p5 }
  0x33   : > { %p666_p12 = pneg %p665_p10 }
  0x35   : > { %p671_p4 = pnand %p670_p2, %p666_p12 }
  0x37   : > { %674 = shalt.err (!%p671_p4)
}
  0x38   : > { %549 = dma.hbm_to_vmem [thread:$0]  (!%p876_p7), %s208_s10, 128, %s210_s6, %s198_s17  }
  0x39   : > { %218 = sbr.rel (%p825_p3) target bundleno = 861 (0x35d), region = 36  ;;  %s911_s12 = sand.u32 (!%p825_p3), 1, %s756_s16  }
  0x3a   : > { %s914_s21 = sshll.u32 (!%p825_p3), %s911_s12, 3  ;;  %s221_s25 = scalar_lea.sflag (!%p825_p3), [#allocation3], %s911_s12 }
  0x3b   : > { %s224_s30 = scalar_lea.vmem (!%p825_p3), [#allocation2], %s914_s21 }
  0x3e   : > { %735 = dma.done.wait (%p856_p13), %s221_s25, 128  }
  0x3f   : > { %737 = vsyncadd (%p856_p13), %s221_s25, 4294967168  ;;  %s230_s17 = sand.u32 1, %s820_s22   ;;  %s234_s6 = scalar_lea.vmem [#allocation5], %s914_s21 }
  0x40   : > { %s231_s23 = scalar_lea.sflag [#allocation6], %s230_s17 }
  0x41   : > { %739 = dma.done.wait (%p856_p13), %s231_s23, 128  }
  0x42   : > { %741 = vsyncadd (%p856_p13), %s231_s23, 4294967168 }
  0x43   : > { %743 = dma.done.wait (%p44_p1), [#allocation6], 512  }
  0x44   : > { %745 = vsyncadd (%p44_p1), [#allocation6], 4294966784  ;;  %v274_v0 = vld [vmem:[#allocation7 + $0x18] sm:$0xff]  ;;  %v273_v1 = vld [vmem:[#allocation7 + $0x10] sm:$0xff]  ;;  %vm279_vm0 = vcmask 261120   ;;  %s769_s5 = smov 96  }
  0x45   : > { %295 = vmatpush.msra.mxu0 %v274_v0  ;;  %v272_v2 = vld [vmem:[#allocation7 + $0x8] sm:$0xff]  ;;  %v271_v3 = vld [vmem:[#allocation7] sm:$0xff]  ;;  %v303_v9 = vld [vmem:[%s234_s6] sm:$0xff]  ;;  %vm337_vm3 = vcmask 64512   ;;  %s770_s28 = smov 64   ;;  %s526_s10 = sshll.u32 %s820_s22, 3 }
  0x46   : > { %v270_v4 = vld [vmem:[%s224_s30] sm:$0xff]  ;;  %s401_s20 = scalar_lea.hbm %s980_s4, %s526_s10  ;;  %s269_s14 = scalar_lea.vmem [#allocation8], %s914_s21 }
  0x47   : > { %296 = vmatpush.msra.mxu0 %v273_v1  ;;  %v595_v5 = vld [vmem:[%s979_s3] ss:$0 sm:$0xff]  ;;  %s403_s19 = sshll.u32 %s269_s14, 4  ;;  %s405_s24 = sshll.u32 %s401_s20, 4  ;;  %s404_s19 = int_to_ptr.vmem [resolvable:$true] %s403_s19  ;;  %s406_s24 = int_to_ptr.hbm [resolvable:$true] %s405_s24 }
  0x48   : > { %s391_s27 = scalar_lea.sflag [#allocation4], %s911_s12  ;;  %s704_s2 = sshra.s32 %s406_s24, 4  ;;  %s705_s2 = int_to_ptr.hbm [resolvable:$true] %s704_s2 }
  0x49   : > { %297 = vmatpush.msra.mxu0 %v272_v2  ;;  %s706_s25 = scalar_lea.hbm %s705_s2, 8  ;;  %s710_s17 = scalar_lea.hbm %s980_s4, 16 }
  0x4a   : > { %p707_p1 = scmp.ne.s32.totalorder %s705_s2, %s706_s25  ;;  %p711_p7 = scmp.lt.s32.totalorder %s705_s2, %s980_s4 }
  0x4b   : > { %298 = vmatpush.msra.mxu0 %v271_v3  ;;  %p712_p9 = scmp.lt.s32.totalorder %s710_s17, %s706_s25 }
  0x4c   : > { %521 = vmatmul.msk.f32.vlgmr.msra.gmra.mxu0 %vm279_vm0, %v270_v4  ;;  %p708_p3 = pnand %p707_p1, %p860_p0 }
  0x4d   : > { %p713_p8 = por %p712_p9, %p711_p7 }
  0x4e   : > { %p709_p13 = pneg %p708_p3 }
  0x50   : > { %p714_p10 = pnand %p713_p8, %p709_p13 }
  0xc9   : > { %v300_v6 = vpop.f32.mrf.mxu0 }
  0xca   : > { %v301_v7 = vadd.f32 %v595_v5, %v300_v6 }
  0xcc   : > { %305 = vrot.lane.b32.xlu0 %v301_v7, %s769_s5 }
 0x13e   : > { %v306_v8 = vpop.permute.xlu0 %305 }
 0x13f   : > { %522 = vmatpush.xpose.msk.msra.mxu1 %vm279_vm0, %v306_v8 }
 0x142   : > { %523 = vmatmul.msk.f32.vlgmr.msra.gmra.mxu1 %vm279_vm0, %v301_v7 }
 0x1bf   : > { %v328_v10 = vpop.f32.mrf.mxu1 }
 0x1c0   : > { %v329_v11 = vadd.f32 %v328_v10, %v303_v9 }
 0x1c2   : > { %vm331_vm1 = vcmp.ne.f32.partialorder %v329_v11, %v329_v11 }
 0x1c3   : > { %v332_v12 = vsel %vm331_vm1, 0.0, %v329_v11 }
 0x1c4   : > { %vm333_vm2 = vcmp.eq.f32.partialorder %v332_v12, inf }
 0x1c5   : > { %v334_v13 = vsel %vm333_vm2, 1.0, %v332_v12 }
 0x1c6   : > { %vm335_vm4 = vcmp.eq.f32.partialorder %v334_v13, -inf }
 0x1c7   : > { %v336_v14 = vsel %vm335_vm4, -1.0, %v334_v13 }
 0x1c8   : > { %v338_v15 = vsel %vm337_vm3, %v336_v14, -inf }
 0x1c9   : > { %339 = vmax.xlane.f32.xlu0 %v338_v15 }
 0x23c   : > { %v340_v16 = vpop.xlane.xlu0 %339 }
 0x23d   : > { %v341_v17 = vsub.f32 %v336_v14, %v340_v16 }
 0x23f   : > { %v342_v18 = vmul.f32 1.442695, %v341_v17 }
 0x241   : > { %596 = vpow2.f32 %v342_v18 }
 0x247   : > { %v597_v19 = vpop.eup %596 }
 0x248   : > { %v344_v20 = vsel %vm337_vm3, %v597_v19, 0.0 }
 0x249   : > { %345 = vadd.xlane.f32.xlu1 %v344_v20 }
 0x262   : > { %363 = vrot.lane.b32.xlu1 %v301_v7, %s770_s28 }
 0x2bc   : > { %v346_v21 = vpop.xlane.xlu1 %345 }
 0x2bd   : > { %598 = vrcp.f32 %v346_v21  ;;  %v358_v27 = vand.u32 2147483648, %v346_v21  ;;  %vm352_vm6 = vweird.f32 %v346_v21  ;;  %v356_v28 = vand.u32 2147483647, %v346_v21 }
 0x2bf   : > { %v359_v30 = vor.u32 1.1754944e-38, %v358_v27  ;;  %vm357_vm8 = vcmp.eq.f32.partialorder %v356_v28, 8.507059e+37 }
 0x2c3   : > { %v599_v22 = vpop.eup %598 }
 0x2c4   : > { %v348_v23 = vmul.f32 %v599_v22, %v346_v21  ;;  %vm353_vm5 = vweird.f32 %v599_v22 }
 0x2c5   : > { %vm354_vm7 = vmor %vm352_vm6, %vm353_vm5 }
 0x2c6   : > { %v349_v24 = vsub.f32 1.0, %v348_v23 }
 0x2c8   : > { %v350_v25 = vmul.f32 %v599_v22, %v349_v24 }
 0x2ca   : > { %v351_v26 = vadd.f32 %v599_v22, %v350_v25 }
 0x2cc   : > { %v355_v29 = vsel %vm354_vm7, %v599_v22, %v351_v26 }
 0x2cd   : > { %v360_v31 = vsel %vm357_vm8, %v359_v30, %v355_v29 }
 0x2ce   : > { %v362_v33 = vmul.f32 %v597_v19, %v360_v31 }
 0x2d4   : > { %v364_v32 = vpop.permute.xlu1 %363 }
 0x2d5   : > { %384 = vmatpush.msra.mxu2 %v364_v32 }
 0x2d6   : > { %524 = vmatmul.msk.f32.vlgmr.msra.gmra.mxu2 %vm337_vm3, %v362_v33 }
 0x359   : > { %v386_v34 = vpop.f32.mrf.mxu2 }
 0x35a   : > { %389 = vst.msk [vmem:[%s269_s14] sm:$0xff] %vm279_vm0, %v386_v34 }
 0x35b   : > { %717 = shalt.err (!%p714_p10)
}
 0x35c   : > { %537 = dma.vmem_to_hbm [thread:$0]  (%p860_p0), %s404_s19, 128, %s406_s24, %s391_s27  }
 0x35d PF: > { %s417_s12 = sand.u32 1, %s752_s15   ;;  %p992_p12 = scmp.ge.s32.totalorder %s764_s18, 2 }
 0x35e   : > { %s418_s6 = scalar_lea.sflag [#allocation4], %s417_s12 }
 0x35f   : > { %p551_p5 = pnand %p992_p12, %p866_p6 }
 0x361   : > { %p552_p11 = pneg %p551_p5 }
 0x363   : > { %747 = dma.done.wait (%p552_p11), %s418_s6, 128  }
 0x364   : > { %749 = vsyncadd (%p552_p11), %s418_s6, 4294967168  ;;  %s993_s8 = sld [smem:[#allocation13_spill]]  ;;  %p20_p2 = scmp.ge.s32.totalorder %s836_s29, 4  }
 0x365   : > { %s994_s17 = sld [smem:[#allocation14_spill]]  ;;  %s995_s15 = smov %s756_s16 }
 0x366   : > { %s997_s18 = smov %s836_s29  ;;  %22 = sbr.rel (!%p20_p2) target bundleno = 9 (0x9), region = 98 }
 0x36a   : > { %s996_s16 = smov %s993_s8 }
 0x36b   :  { %424 = vsyncpa [#allocation3], 1 }
 0x36c   :  { %426 = vsyncpa [#allocation3 + $0x1], 1 }
 0x36d   :  { %427 = vsyncpa [#allocation6], 1 }
 0x36e   :  { %429 = vsyncpa [#allocation6 + $0x1], 1 }
 0x36f   :  { %430 = vsyncpa [#allocation4], 1 }
 0x370   :  { %432 = vsyncpa [#allocation4 + $0x1], 1 }

</bundles_post_ra>
